<compile_context>
chip_gen: v7x
topology: tpu7x:2x2x1
jax: 0.10.0
libtpu: 0.0.40
codegen_flags: <defaults>
</compile_context>

<pallas_src>
import functools

import jax
import jax.numpy as jnp
from jax.experimental import pallas as pl
from jax.experimental.pallas import tpu as pltpu

_BN_EPS = 1e-5


def _round_up(x, m):
    return (x + m - 1) // m * m


def _cdiv(a, b):
    return (a + b - 1) // b


# ----------------------------- Pallas kernels ------------------------------

def _matmul_stats_kernel(a_ref, b_ref, y_ref, s_ref, ss_ref, acc_ref):
    """Tiled conv-as-matmul: y = A @ B (bf16 in, f32 acc) + per-channel partial stats."""
    @pl.when(pl.program_id(2) == 0)
    def _():
        acc_ref[...] = jnp.zeros_like(acc_ref)

    acc_ref[...] += jnp.dot(a_ref[...], b_ref[...],
                            preferred_element_type=jnp.float32)

    @pl.when(pl.program_id(2) == pl.num_programs(2) - 1)
    def _():
        acc = acc_ref[...]
        y_ref[...] = acc
        s_ref[...] = jnp.sum(acc, axis=0, keepdims=True).reshape(s_ref.shape)
        ss_ref[...] = jnp.sum(acc * acc, axis=0, keepdims=True).reshape(ss_ref.shape)


def _bn_act_kernel(y_ref, sc_ref, bi_ref, o_ref, *, relu):
    out = y_ref[...] * sc_ref[...] + bi_ref[...]
    if relu:
        out = jnp.maximum(out, 0.0)
    o_ref[...] = out


def _bn_act_res_kernel(y_ref, sc_ref, bi_ref, r_ref, o_ref, *, relu):
    out = y_ref[...] * sc_ref[...] + bi_ref[...] + r_ref[...]
    if relu:
        out = jnp.maximum(out, 0.0)
    o_ref[...] = out


def _max_taps_kernel(x_ref, o_ref):
    # x: (taps, tm, C) -> max over taps  (3x3 max-pool), tiled over M
    o_ref[...] = jnp.max(x_ref[...], axis=0)


def _avgpool_kernel(x_ref, o_ref):
    # x: (1, H*W, C) -> mean over spatial  (adaptive avg-pool to 1x1), tiled over batch
    o_ref[...] = jnp.mean(x_ref[...], axis=1, keepdims=True)


def _linear_kernel(x_ref, w_ref, b_ref, o_ref):
    o_ref[...] = jnp.dot(x_ref[...], w_ref[...],
                         preferred_element_type=jnp.float32) + b_ref[...]


# ------------------------------ JAX glue / wrappers -------------------------

def _im2col(x, kh, kw, stride, padding):
    n, h, w, c = x.shape
    ho = (h + 2 * padding - kh) // stride + 1
    wo = (w + 2 * padding - kw) // stride + 1
    if kh == 1 and kw == 1 and padding == 0 and stride == 1:
        # 1x1 stride-1 conv: pure reshape, no materialized duplication.
        return x.reshape(n * ho * wo, c), ho, wo
    if padding:
        x = jnp.pad(x, ((0, 0), (padding, padding), (padding, padding), (0, 0)))
    taps = []
    for i in range(kh):
        for j in range(kw):
            taps.append(
                jax.lax.slice(
                    x,
                    (0, i, j, 0),
                    (n, i + (ho - 1) * stride + 1, j + (wo - 1) * stride + 1, c),
                    (1, stride, stride, 1)))
    cols = jnp.concatenate(taps, axis=-1)            # (n, ho, wo, kh*kw*c)
    return cols.reshape(n * ho * wo, kh * kw * c), ho, wo


def _matmul_bn_stats(a, b):
    """a: (m, k), b: (k, cout)  ->  y (mp, np) f32, partial s/ss (gm, 1, np)."""
    m, kdim = a.shape
    cout = b.shape[1]
    # ---- tile selection (fits comfortably in every generation's scoped VMEM) ----
    tm = 256 if m >= 256 else _round_up(m, 16)            # bf16 sublane pack = 16
    tn = 256 if cout >= 256 else _round_up(cout, 128)     # lane-dense output
    kp0 = _round_up(kdim, 128)
    if kp0 <= 2304:
        tk = kp0
    else:
        nchunks = _cdiv(kp0, 2048)
        tk = _round_up(_cdiv(kp0, nchunks), 128)
    mp = _round_up(m, tm)
    np_ = _round_up(cout, tn)
    kp = _round_up(kdim, tk)
    gm, gn, gk = mp // tm, np_ // tn, kp // tk

    a_p = jnp.pad(a, ((0, mp - m), (0, kp - kdim))).astype(jnp.bfloat16)
    b_p = jnp.pad(b, ((0, kp - kdim), (0, np_ - cout))).astype(jnp.bfloat16)

    y, s, ss = pl.pallas_call(
        _matmul_stats_kernel,
        grid=(gm, gn, gk),
        in_specs=[pl.BlockSpec((tm, tk), lambda i, j, k: (i, k)),
                  pl.BlockSpec((tk, tn), lambda i, j, k: (k, j))],
        out_specs=(pl.BlockSpec((tm, tn), lambda i, j, k: (i, j)),
                   pl.BlockSpec((1, 1, tn), lambda i, j, k: (i, 0, j)),
                   pl.BlockSpec((1, 1, tn), lambda i, j, k: (i, 0, j))),
        out_shape=(jax.ShapeDtypeStruct((mp, np_), jnp.float32),
                   jax.ShapeDtypeStruct((gm, 1, np_), jnp.float32),
                   jax.ShapeDtypeStruct((gm, 1, np_), jnp.float32)),
        scratch_shapes=[pltpu.VMEM((tm, tn), jnp.float32)],
        compiler_params=pltpu.CompilerParams(
            dimension_semantics=("parallel", "parallel", "arbitrary")),
    )(a_p, b_p)
    return y, s, ss, (mp, np_, tm, tn, gm, gn)


def _bn_apply(y, s, ss, m_true, cout, gamma, beta, residual, relu, dims):
    mp, np_, tm, tn, gm, gn = dims
    # train-mode BN: batch mean / biased variance over (N, H, W) per channel (f32)
    s_tot = jnp.sum(s, axis=(0, 1))
    ss_tot = jnp.sum(ss, axis=(0, 1))
    mean = s_tot / m_true
    var = jnp.maximum(ss_tot / m_true - mean * mean, 0.0)
    inv = jax.lax.rsqrt(var + _BN_EPS)
    gamma_p = jnp.pad(gamma, (0, np_ - cout))
    beta_p = jnp.pad(beta, (0, np_ - cout))
    scale = (gamma_p * inv).reshape(1, np_)
    bias = (beta_p - mean * gamma_p * inv).reshape(1, np_)

    bn_specs = [pl.BlockSpec((tm, tn), lambda i, j: (i, j)),
                pl.BlockSpec((1, tn), lambda i, j: (0, j)),
                pl.BlockSpec((1, tn), lambda i, j: (0, j))]
    out_spec = pl.BlockSpec((tm, tn), lambda i, j: (i, j))
    out_shape = jax.ShapeDtypeStruct((mp, np_), jnp.float32)
    cparams = pltpu.CompilerParams(dimension_semantics=("parallel", "parallel"))

    if residual is None:
        out = pl.pallas_call(
            functools.partial(_bn_act_kernel, relu=relu),
            grid=(gm, gn), in_specs=bn_specs, out_specs=out_spec,
            out_shape=out_shape, compiler_params=cparams,
        )(y, scale, bias)
    else:
        r = jnp.pad(residual, ((0, mp - residual.shape[0]), (0, np_ - cout)))
        out = pl.pallas_call(
            functools.partial(_bn_act_res_kernel, relu=relu),
            grid=(gm, gn),
            in_specs=bn_specs + [pl.BlockSpec((tm, tn), lambda i, j: (i, j))],
            out_specs=out_spec, out_shape=out_shape, compiler_params=cparams,
        )(y, scale, bias, r)
    return out


@functools.partial(jax.jit, static_argnames=("kh", "kw", "stride", "padding", "relu"))
def conv_bn(x, w, gamma, beta, residual=None, *, kh, kw, stride, padding, relu):
    """Conv2d(bias=False) + train-mode BatchNorm2d (+ optional residual) (+ optional ReLU)."""
    n = x.shape[0]
    cols, ho, wo = _im2col(x.astype(jnp.bfloat16), kh, kw, stride, padding)
    m = cols.shape[0]
    cout = w.shape[1]
    y, s, ss, dims = _matmul_bn_stats(cols, w)
    res2d = None if residual is None else residual.reshape(m, cout)
    out = _bn_apply(y, s, ss, m, cout, gamma, beta, res2d, relu, dims)
    return out[:m, :cout].reshape(n, ho, wo, cout)


@functools.partial(jax.jit, static_argnames=("k", "stride", "padding"))
def maxpool(x, *, k, stride, padding):
    n, h, w, c = x.shape
    neg = jnp.finfo(x.dtype).min
    xp = jnp.pad(x, ((0, 0), (padding, padding), (padding, padding), (0, 0)),
                 constant_values=neg)
    ho = (h + 2 * padding - k) // stride + 1
    wo = (w + 2 * padding - k) // stride + 1
    taps = []
    for i in range(k):
        for j in range(k):
            taps.append(
                jax.lax.slice(
                    xp,
                    (0, i, j, 0),
                    (n, i + (ho - 1) * stride + 1, j + (wo - 1) * stride + 1, c),
                    (1, stride, stride, 1)))
    m = n * ho * wo
    stacked = jnp.stack(taps, axis=0).reshape(k * k, m, c)
    tm = 512 if m >= 512 else _round_up(m, 8)
    mp = _round_up(m, tm)
    stacked = jnp.pad(stacked, ((0, 0), (0, mp - m), (0, 0)), constant_values=neg)
    out = pl.pallas_call(
        _max_taps_kernel,
        grid=(mp // tm,),
        in_specs=[pl.BlockSpec((k * k, tm, c), lambda i: (0, i, 0))],
        out_specs=pl.BlockSpec((tm, c), lambda i: (i, 0)),
        out_shape=jax.ShapeDtypeStruct((mp, c), x.dtype),
        compiler_params=pltpu.CompilerParams(dimension_semantics=("parallel",)),
    )(stacked)
    return out[:m].reshape(n, ho, wo, c)


@jax.jit
def global_avgpool(x):
    n, h, w, c = x.shape
    out = pl.pallas_call(
        _avgpool_kernel,
        grid=(n,),
        in_specs=[pl.BlockSpec((1, h * w, c), lambda i: (i, 0, 0))],
        out_specs=pl.BlockSpec((1, 1, c), lambda i: (i, 0, 0)),
        out_shape=jax.ShapeDtypeStruct((n, 1, c), x.dtype),
        compiler_params=pltpu.CompilerParams(dimension_semantics=("parallel",)),
    )(x.reshape(n, h * w, c))
    return out.reshape(n, c)


@jax.jit
def linear(x, w, b):
    n = x.shape[0]
    cout = w.shape[1]
    np_ = _round_up(cout, 128)          # lane-dense output (200 -> 256), sliced below
    w_p = jnp.pad(w, ((0, 0), (0, np_ - cout))).astype(jnp.bfloat16)
    b_p = jnp.pad(b, (0, np_ - cout)).reshape(1, np_)
    out = pl.pallas_call(
        _linear_kernel,
        out_shape=jax.ShapeDtypeStruct((n, np_), jnp.float32),
    )(x.astype(jnp.bfloat16), w_p, b_p)
    return out[:, :cout]


# ------------------------------ parameter init ------------------------------

def _conv_init(key, cin, cout, kh, kw):
    # kaiming-normal-like, stored directly in im2col layout (kh*kw*cin, cout)
    std = (2.0 / (cin * kh * kw)) ** 0.5
    return jax.random.normal(key, (kh * kw * cin, cout), jnp.float32) * std


def _bn_init(c):
    return jnp.ones((c,), jnp.float32), jnp.zeros((c,), jnp.float32)


def init_resnet152_params(key, num_classes=200):
    # resnet152: bottleneck blocks [3, 8, 36, 3], widths [64, 128, 256, 512], expansion 4
    stages_cfg = [(64, 3, 1), (128, 8, 2), (256, 36, 2), (512, 3, 2)]
    key, k = jax.random.split(key)
    g, b = _bn_init(64)
    params = {"stem": {"w": _conv_init(k, 3, 64, 7, 7), "gamma": g, "beta": b}}
    inplanes = 64
    stages = []
    for planes, nblocks, stride in stages_cfg:
        blocks = []
        for bi in range(nblocks):
            s = stride if bi == 0 else 1
            key, k1, k2, k3, kd = jax.random.split(key, 5)
            g1, b1 = _bn_init(planes)
            g2, b2 = _bn_init(planes)
            g3, b3 = _bn_init(planes * 4)
            blk = {
                "stride": s,
                "conv1": {"w": _conv_init(k1, inplanes, planes, 1, 1), "gamma": g1, "beta": b1},
                "conv2": {"w": _conv_init(k2, planes, planes, 3, 3), "gamma": g2, "beta": b2},
                "conv3": {"w": _conv_init(k3, planes, planes * 4, 1, 1), "gamma": g3, "beta": b3},
            }
            if s != 1 or inplanes != planes * 4:
                gd, bd = _bn_init(planes * 4)
                blk["downsample"] = {"w": _conv_init(kd, inplanes, planes * 4, 1, 1),
                                     "gamma": gd, "beta": bd}
            blocks.append(blk)
            inplanes = planes * 4
        stages.append(blocks)
    params["stages"] = stages
    feat = 512 * 4
    key, kw_, kb_ = jax.random.split(key, 3)
    bound = 1.0 / (feat ** 0.5)
    params["fc_w"] = jax.random.uniform(kw_, (feat, num_classes), jnp.float32, -bound, bound)
    params["fc_b"] = jax.random.uniform(kb_, (num_classes,), jnp.float32, -bound, bound)
    return params


# ------------------------------ forward pass --------------------------------

def resnet152_forward(x_nchw, params):
    x = jnp.transpose(x_nchw, (0, 2, 3, 1)).astype(jnp.float32)   # NCHW -> NHWC
    st = params["stem"]
    x = conv_bn(x, st["w"], st["gamma"], st["beta"],
                kh=7, kw=7, stride=2, padding=3, relu=True)
    x = maxpool(x, k=3, stride=2, padding=1)
    for blocks in params["stages"]:
        for blk in blocks:
            s = blk["stride"]
            c1, c2, c3 = blk["conv1"], blk["conv2"], blk["conv3"]
            out = conv_bn(x, c1["w"], c1["gamma"], c1["beta"],
                          kh=1, kw=1, stride=1, padding=0, relu=True)
            out = conv_bn(out, c2["w"], c2["gamma"], c2["beta"],
                          kh=3, kw=3, stride=s, padding=1, relu=True)
            if "downsample" in blk:
                d = blk["downsample"]
                identity = conv_bn(x, d["w"], d["gamma"], d["beta"],
                                   kh=1, kw=1, stride=s, padding=0, relu=False)
            else:
                identity = x
            x = conv_bn(out, c3["w"], c3["gamma"], c3["beta"], identity,
                        kh=1, kw=1, stride=1, padding=0, relu=True)
    x = global_avgpool(x)                                # (N, 2048)
    return linear(x, params["fc_w"], params["fc_b"])     # (N, 200)


# ---------------------------------- main -------------------------------------

if __name__ == "__main__":
    key = jax.random.PRNGKey(0)
    pkey, xkey = jax.random.split(key)
    params = init_resnet152_params(pkey, num_classes=200)
    # small input consistent with the module: NCHW, 3 channels (conv1 expects 3)
    x = jax.random.normal(xkey, (2, 3, 32, 32), jnp.float32)
    logits = resnet152_forward(x, params)
    logits = jax.block_until_ready(logits)
    assert logits.shape == (2, 200)
    assert bool(jnp.all(jnp.isfinite(logits)))
    print("KERNEL_OK")
</pallas_src>

<mosaic_0001>
module attributes {stable_mosaic.version = 11 : i64} {
  func.func @_matmul_stats_kernel(%arg0: i32, %arg1: i32, %arg2: i32, %arg3: memref<256x256xbf16, #tpu.memory_space<vmem>>, %arg4: memref<256x128xbf16, #tpu.memory_space<vmem>>, %arg5: memref<256x128xf32, #tpu.memory_space<vmem>>, %arg6: memref<1x1x128xf32, #tpu.memory_space<vmem>>, %arg7: memref<1x1x128xf32, #tpu.memory_space<vmem>>, %arg8: memref<256x128xf32, #tpu.memory_space<vmem>>) attributes {dimension_semantics = [#tpu.dimension_semantics<parallel>, #tpu.dimension_semantics<parallel>, #tpu.dimension_semantics<arbitrary>], iteration_bounds = array<i64: 2, 1, 1>, scalar_prefetch = 0 : i64, scratch_operands = 1 : i64, tpu.core_type = #tpu.core_type<tc>, window_params = [{transform_indices = @transform_0, window_bounds = array<i64: 256, 256>}, {transform_indices = @transform_1, window_bounds = array<i64: 256, 128>}, {transform_indices = @transform_2, window_bounds = array<i64: 256, 128>}, {transform_indices = @transform_3, window_bounds = array<i64: 1, 1, 128>}, {transform_indices = @transform_4, window_bounds = array<i64: 1, 1, 128>}]} {
    %c0_i32 = arith.constant 0 : i32
    %0 = arith.cmpi eq, %arg2, %c0_i32 : i32
    %1 = arith.extui %0 : i1 to i32
    %c0_i32_0 = arith.constant 0 : i32
    %2 = arith.cmpi ne, %1, %c0_i32_0 : i32
    scf.if %2 {
      %cst_10 = arith.constant 0.000000e+00 : f32
      %12 = vector.broadcast %cst_10 : f32 to vector<256x128xf32>
      %c0_11 = arith.constant 0 : index
      %c0_12 = arith.constant 0 : index
      %13 = vector.load %arg8[%c0_11, %c0_12] : memref<256x128xf32, #tpu.memory_space<vmem>>, vector<256x128xf32>
      tpu.vector_store %arg8[%c0_11, %c0_12], %12 {strides = array<i32>} : memref<256x128xf32, #tpu.memory_space<vmem>>, vector<256x128xf32>,
    } else {
    }
    %c0 = arith.constant 0 : index
    %c0_1 = arith.constant 0 : index
    %3 = vector.load %arg8[%c0, %c0_1] : memref<256x128xf32, #tpu.memory_space<vmem>>, vector<256x128xf32>
    %c0_2 = arith.constant 0 : index
    %c0_3 = arith.constant 0 : index
    %4 = vector.load %arg3[%c0_2, %c0_3] : memref<256x256xbf16, #tpu.memory_space<vmem>>, vector<256x256xbf16>
    %c0_4 = arith.constant 0 : index
    %c0_5 = arith.constant 0 : index
    %5 = vector.load %arg4[%c0_4, %c0_5] : memref<256x128xbf16, #tpu.memory_space<vmem>>, vector<256x128xbf16>
    %cst = arith.constant dense<0.000000e+00> : vector<256x128xf32>
    %6 = tpu.matmul %4, %5, %cst {dimension_numbers = #tpu.dot_dimension_numbers<[1], [0], [0], [1], [0, 0, 1, 1], [], []>} : vector<256x256xbf16>, vector<256x128xbf16>, vector<256x128xf32> -> vector<256x128xf32>
    %7 = arith.addf %3, %6 : vector<256x128xf32>
    %c0_6 = arith.constant 0 : index
    %c0_7 = arith.constant 0 : index
    %8 = vector.load %arg8[%c0_6, %c0_7] : memref<256x128xf32, #tpu.memory_space<vmem>>, vector<256x128xf32>
    tpu.vector_store %arg8[%c0_6, %c0_7], %7 {strides = array<i32>} : memref<256x128xf32, #tpu.memory_space<vmem>>, vector<256x128xf32>,
    %c0_i32_8 = arith.constant 0 : i32
    %9 = arith.cmpi eq, %arg2, %c0_i32_8 : i32
    %10 = arith.extui %9 : i1 to i32
    %c0_i32_9 = arith.constant 0 : i32
    %11 = arith.cmpi ne, %10, %c0_i32_9 : i32
    scf.if %11 {
      %c0_10 = arith.constant 0 : index
      %c0_11 = arith.constant 0 : index
      %12 = vector.load %arg8[%c0_10, %c0_11] : memref<256x128xf32, #tpu.memory_space<vmem>>, vector<256x128xf32>
      %c0_12 = arith.constant 0 : index
      %c0_13 = arith.constant 0 : index
      %13 = vector.load %arg5[%c0_12, %c0_13] : memref<256x128xf32, #tpu.memory_space<vmem>>, vector<256x128xf32>
      tpu.vector_store %arg5[%c0_12, %c0_13], %12 {strides = array<i32>} : memref<256x128xf32, #tpu.memory_space<vmem>>, vector<256x128xf32>,
      %cst_14 = arith.constant dense<0.000000e+00> : vector<128xf32>
      %14 = vector.multi_reduction <add>, %12, %cst_14 [0] : vector<256x128xf32> to vector<128xf32>
      %15 = vector.shape_cast %14 : vector<128xf32> to vector<1x128xf32>
      %16 = vector.shape_cast %15 : vector<1x128xf32> to vector<1x1x128xf32>
      %c0_15 = arith.constant 0 : index
      %c0_16 = arith.constant 0 : index
      %c0_17 = arith.constant 0 : index
      %17 = vector.load %arg6[%c0_15, %c0_16, %c0_17] : memref<1x1x128xf32, #tpu.memory_space<vmem>>, vector<1x1x128xf32>
      tpu.vector_store %arg6[%c0_15, %c0_16, %c0_17], %16 {strides = array<i32>} : memref<1x1x128xf32, #tpu.memory_space<vmem>>, vector<1x1x128xf32>,
      %18 = arith.mulf %12, %12 : vector<256x128xf32>
      %cst_18 = arith.constant dense<0.000000e+00> : vector<128xf32>
      %19 = vector.multi_reduction <add>, %18, %cst_18 [0] : vector<256x128xf32> to vector<128xf32>
      %20 = vector.shape_cast %19 : vector<128xf32> to vector<1x128xf32>
      %21 = vector.shape_cast %20 : vector<1x128xf32> to vector<1x1x128xf32>
      %c0_19 = arith.constant 0 : index
      %c0_20 = arith.constant 0 : index
      %c0_21 = arith.constant 0 : index
      %22 = vector.load %arg7[%c0_19, %c0_20, %c0_21] : memref<1x1x128xf32, #tpu.memory_space<vmem>>, vector<1x1x128xf32>
      tpu.vector_store %arg7[%c0_19, %c0_20, %c0_21], %21 {strides = array<i32>} : memref<1x1x128xf32, #tpu.memory_space<vmem>>, vector<1x1x128xf32>,
    } else {
    }
    return
  }
  func.func @transform_0(%arg0: i32, %arg1: i32, %arg2: i32) -> (i32, i32) {
    %c0_i32 = arith.constant 0 : i32
    return %arg0, %arg2 : i32, i32
  }
  func.func @transform_1(%arg0: i32, %arg1: i32, %arg2: i32) -> (i32, i32) {
    %c0_i32 = arith.constant 0 : i32
    return %arg2, %arg1 : i32, i32
  }
  func.func @transform_2(%arg0: i32, %arg1: i32, %arg2: i32) -> (i32, i32) {
    %c0_i32 = arith.constant 0 : i32
    return %arg0, %arg1 : i32, i32
  }
  func.func @transform_3(%arg0: i32, %arg1: i32, %arg2: i32) -> (i32, i32, i32) {
    %c0_i32 = arith.constant 0 : i32
    %c0_i32_0 = arith.constant 0 : i32
    return %arg0, %c0_i32, %arg1 : i32, i32, i32
  }
  func.func @transform_4(%arg0: i32, %arg1: i32, %arg2: i32) -> (i32, i32, i32) {
    %c0_i32 = arith.constant 0 : i32
    %c0_i32_0 = arith.constant 0 : i32
    return %arg0, %c0_i32, %arg1 : i32, i32, i32
  }
}

module attributes {stable_mosaic.version = 11 : i64} {
  func.func @_bn_act_kernel(%arg0: i32, %arg1: i32, %arg2: memref<256x128xf32, #tpu.memory_space<vmem>>, %arg3: memref<1x128xf32, #tpu.memory_space<vmem>>, %arg4: memref<1x128xf32, #tpu.memory_space<vmem>>, %arg5: memref<256x128xf32, #tpu.memory_space<vmem>>) attributes {dimension_semantics = [#tpu.dimension_semantics<parallel>, #tpu.dimension_semantics<parallel>], iteration_bounds = array<i64: 2, 1>, scalar_prefetch = 0 : i64, scratch_operands = 0 : i64, tpu.core_type = #tpu.core_type<tc>, window_params = [{transform_indices = @transform_0, window_bounds = array<i64: 256, 128>}, {transform_indices = @transform_1, window_bounds = array<i64: 1, 128>}, {transform_indices = @transform_2, window_bounds = array<i64: 1, 128>}, {transform_indices = @transform_3, window_bounds = array<i64: 256, 128>}]} {
    %c0 = arith.constant 0 : index
    %c0_0 = arith.constant 0 : index
    %0 = vector.load %arg2[%c0, %c0_0] : memref<256x128xf32, #tpu.memory_space<vmem>>, vector<256x128xf32>
    %c0_1 = arith.constant 0 : index
    %c0_2 = arith.constant 0 : index
    %1 = vector.load %arg3[%c0_1, %c0_2] : memref<1x128xf32, #tpu.memory_space<vmem>>, vector<1x128xf32>
    %2 = vector.broadcast %1 : vector<1x128xf32> to vector<256x128xf32>
    %3 = arith.mulf %0, %2 : vector<256x128xf32>
    %c0_3 = arith.constant 0 : index
    %c0_4 = arith.constant 0 : index
    %4 = vector.load %arg4[%c0_3, %c0_4] : memref<1x128xf32, #tpu.memory_space<vmem>>, vector<1x128xf32>
    %5 = vector.broadcast %4 : vector<1x128xf32> to vector<256x128xf32>
    %6 = arith.addf %3, %5 : vector<256x128xf32>
    %cst = arith.constant 0.000000e+00 : f32
    %7 = vector.broadcast %cst : f32 to vector<256x128xf32>
    %8 = arith.maximumf %6, %7 : vector<256x128xf32>
    %c0_5 = arith.constant 0 : index
    %c0_6 = arith.constant 0 : index
    %9 = vector.load %arg5[%c0_5, %c0_6] : memref<256x128xf32, #tpu.memory_space<vmem>>, vector<256x128xf32>
    tpu.vector_store %arg5[%c0_5, %c0_6], %8 {strides = array<i32>} : memref<256x128xf32, #tpu.memory_space<vmem>>, vector<256x128xf32>,
    return
  }
  func.func @transform_0(%arg0: i32, %arg1: i32) -> (i32, i32) {
    %c0_i32 = arith.constant 0 : i32
    return %arg0, %arg1 : i32, i32
  }
  func.func @transform_1(%arg0: i32, %arg1: i32) -> (i32, i32) {
    %c0_i32 = arith.constant 0 : i32
    %c0_i32_0 = arith.constant 0 : i32
    return %c0_i32, %arg1 : i32, i32
  }
  func.func @transform_2(%arg0: i32, %arg1: i32) -> (i32, i32) {
    %c0_i32 = arith.constant 0 : i32
    %c0_i32_0 = arith.constant 0 : i32
    return %c0_i32, %arg1 : i32, i32
  }
  func.func @transform_3(%arg0: i32, %arg1: i32) -> (i32, i32) {
    %c0_i32 = arith.constant 0 : i32
    return %arg0, %arg1 : i32, i32
  }
}

</mosaic_0001>

<bundles_post_ra>
// kernel: conv_bn.3
= control target key start
LH: loop header
LB: loop body
LE: loop exit
PB: predicated region body
PF: predicated region fallthrough
CT: control target
= control target key end

     0   :  { %8 = vsyncpa [#allocation3], 0  ;;  %s955_s0 = inlined_call_operand.vmem [shape: f32[512,128], index: 0, kind: input, shape index: {}]   ;;  %s956_s1 = inlined_call_operand.vmem [shape: f32[1,128], index: 1, kind: input, shape index: {}]   ;;  %s957_s2 = inlined_call_operand.vmem [shape: f32[1,128], index: 2, kind: input, shape index: {}]   ;;  %s958_s3 = inlined_call_operand.hbm [shape: f32[512,128], index: 3, kind: output, shape index: {}]  }
   0x1   :  { %10 = vsyncpa [#allocation3 + $0x1], 0  ;;  %s691_s12 = smov 0   ;;  %s693_s13 = smov 0  }
   0x2   :  { %s695_s14 = smov 0   ;;  %s697_s15 = smov 0  }
   0x3   :  { %s699_s16 = smov 0   ;;  %s701_s17 = smov 0  }
   0x4 LB: > { %s513_s18 = sadd.s32 4294967295, %s666_s17   ;;  %s514_s19 = sadd.s32 4294967294, %s666_s17   ;;  %s666_s17 = sphi %s701_s17, %s16_s17   ;;  %s662_s16 = sphi %s699_s16, %s965_s16   ;;  %s658_s15 = sphi %s697_s15, %s964_s15   ;;  %s654_s14 = sphi %s695_s14, %s963_s14   ;;  %s650_s13 = sphi %s693_s13, %s962_s13   ;;  %s646_s12 = sphi %s691_s12, %s961_s12  }
   0x5   : > { %s28_s20 = sadd.s32 1, %s662_s16  ;;  %s117_s21 = sadd.s32 1, %s654_s14 }
   0x6   : > { %p30_p0 = scmp.ge.s32.totalorder %s28_s20, 2  ;;  %p127_p1 = scmp.ne.s32.totalorder %s654_s14, %s650_s13 }
   0x7   : > { %p128_p2 = scmp.eq.s32.totalorder %s513_s18, 1  ;;  %p133_p3 = scmp.ne.s32.totalorder %s650_s13, %s646_s12 }
   0x8   : > { %s967_s20 = smov (%p30_p0, %s28_s20), 0  ;;  %p134_p5 = scmp.eq.s32.totalorder %s514_s19, 1 }
   0x9   : > { %p731_p4 = por %p128_p2, %p127_p1  ;;  %s112_s23 = ssub.s32 %s662_s16, %s967_s20 }
   0xa   : > { %p519_p6 = scmp.ge.s32.totalorder %s666_s17, 1  ;;  %p115_p7 = scmp.eq.s32.totalorder %s112_s23, 0 }
   0xb   : > { %p738_p8 = por %p134_p5, %p133_p3  ;;  %p176_p9 = scmp.lt.s32.totalorder %s666_s17, 3 }
   0xc   : > { %s744_s25 = scalar_select %p115_p7, %s654_s14, %s117_s21  }
   0xd   : > { %p177_p10 = pnand %p519_p6, %p176_p9 }
   0xe   : > { %s521_s26 = sshll.u32 (!%p177_p10), %s658_s15, 5  ;;  %s206_s27 = sand.u32 (!%p177_p10), 1, %s650_s13   ;;  %v751_v0 = vld [vmem:[%s956_s1] ss:$0 sm:$0xff] (!%p177_p10) }
   0xf   : > { %180 = sbr.rel (%p177_p10) target bundleno = 69 (0x45), region = 32  ;;  %p210_p11 = scmp.lt.s32.totalorder (!%p177_p10), %s521_s26, 63  ;;  %v761_v1 = vld [vmem:[%s957_s2] ss:$0 sm:$0xff] (!%p177_p10) }
  0x10   : > { %s768_s9 = sshll.u32 (!%p177_p10), %s206_s27, 8  ;;  %s530_s11 = sshll.u32 (!%p177_p10), %s658_s15, 12 }
  0x11   : > { %s799_s10 = scalar_lea.vmem (!%p177_p10), [#allocation2], %s768_s9  ;;  %s898_s21 = scalar_lea.hbm (!%p177_p10), %s958_s3, %s530_s11 }
  0x12   : > { %s414_s18 = sshll.u32 (!%p177_p10), %s799_s10, 4  ;;  %s909_s23 = scalar_lea.sflag (!%p177_p10), [#allocation3], %s206_s27  ;;  %s900_s18 = int_to_ptr.vmem [resolvable:$true] %s414_s18 }
  0x16   : > { %s969_s26 = smov (!%p210_p11, %s521_s26), 63 }
  0x17   : > { %s522_s28 = sshll.u32 %s969_s26, 3  ;;  %s588_s26 = scalar_lea.vmem %s900_s18, 4096 }
  0x18   : > { %s756_s6 = scalar_lea.vmem %s955_s0, %s522_s28  ;;  %p589_p12 = scmp.ne.s32.totalorder %s900_s18, %s588_s26 }
  0x19   : > { %v225_v2 = vld [vmem:[%s756_s6] sm:$0xff]  ;;  %v226_v3 = vld [vmem:[%s756_s6 + $0x8] sm:$0xff]  ;;  %v227_v4 = vld [vmem:[%s756_s6 + $0x10] sm:$0xff]  ;;  %s668_s28 = smov [#allocation2]  }
  0x1a   : > { %v264_v5 = vmul.f32 %v751_v0, %v225_v2  ;;  %v265_v6 = vmul.f32 %v751_v0, %v226_v3  ;;  %v266_v7 = vmul.f32 %v751_v0, %v227_v4  ;;  %v228_v8 = vld [vmem:[%s756_s6 + $0x18] sm:$0xff]  ;;  %v229_v9 = vld [vmem:[%s756_s6 + $0x20] sm:$0xff]  ;;  %v230_v10 = vld [vmem:[%s756_s6 + $0x28] sm:$0xff]  ;;  %p590_p13 = pnand %p589_p12, %p731_p4  ;;  %s592_s29 = sshll.u32 %s668_s28, 4  ;;  %s593_s29 = int_to_ptr.vmem [resolvable:$false] %s592_s29 }
  0x1b   : > { %v267_v11 = vmul.f32 %v751_v0, %v228_v8  ;;  %v268_v12 = vmul.f32 %v751_v0, %v229_v9  ;;  %v269_v13 = vmul.f32 %v751_v0, %v230_v10  ;;  %v231_v14 = vld [vmem:[%s756_s6 + $0x30] sm:$0xff]  ;;  %v232_v15 = vld [vmem:[%s756_s6 + $0x38] sm:$0xff]  ;;  %v233_v24 = vld [vmem:[%s756_s6 + $0x40] sm:$0xff]  ;;  %s594_s30 = scalar_lea.vmem %s593_s29, 8192  ;;  %p595_p1 = scmp.lt.s32.totalorder %s900_s18, %s593_s29 }
  0x1c   : > { %v303_v16 = vadd.f32 %v761_v1, %v264_v5  ;;  %v304_v17 = vadd.f32 %v761_v1, %v265_v6  ;;  %v305_v18 = vadd.f32 %v761_v1, %v266_v7  ;;  %v270_v19 = vmul.f32 %v751_v0, %v231_v14  ;;  %v234_v25 = vld [vmem:[%s756_s6 + $0x48] sm:$0xff]  ;;  %v235_v26 = vld [vmem:[%s756_s6 + $0x50] sm:$0xff]  ;;  %v236_v31 = vld [vmem:[%s756_s6 + $0x58] sm:$0xff]  ;;  %p591_p0 = pneg %p590_p13  ;;  %p596_p2 = scmp.lt.s32.totalorder %s594_s30, %s588_s26 }
  0x1d   : > { %v306_v20 = vadd.f32 %v761_v1, %v267_v11  ;;  %v307_v21 = vadd.f32 %v761_v1, %v268_v12  ;;  %v308_v22 = vadd.f32 %v761_v1, %v269_v13  ;;  %v271_v23 = vmul.f32 %v751_v0, %v232_v15  ;;  %v237_v32 = vld [vmem:[%s756_s6 + $0x60] sm:$0xff]  ;;  %v238_v33 = vld [vmem:[%s756_s6 + $0x68] sm:$0xff]  ;;  %v239_v38 = vld [vmem:[%s756_s6 + $0x70] sm:$0xff] }
  0x1e   : > { %v335_v27 = vmax.f32 %v303_v16, 0.0  ;;  %v336_v28 = vmax.f32 %v304_v17, 0.0  ;;  %v337_v29 = vmax.f32 %v305_v18, 0.0  ;;  %v309_v30 = vadd.f32 %v761_v1, %v270_v19  ;;  %v240_v43 = vld [vmem:[%s756_s6 + $0x78] sm:$0xff]  ;;  %v241_v56 = vld [vmem:[%s756_s6 + $0x80] sm:$0xff]  ;;  %v242_v57 = vld [vmem:[%s756_s6 + $0x88] sm:$0xff]  ;;  %p597_p3 = por %p596_p2, %p595_p1 }
  0x1f   : > { %v338_v34 = vmax.f32 %v306_v20, 0.0  ;;  %v339_v35 = vmax.f32 %v307_v21, 0.0  ;;  %v340_v36 = vmax.f32 %v308_v22, 0.0  ;;  %v310_v37 = vadd.f32 %v761_v1, %v271_v23  ;;  %v243_v58 = vld [vmem:[%s756_s6 + $0x90] sm:$0xff]  ;;  %v244_v63 = vld [vmem:[%s756_s6 + $0x98] sm:$0xff]  ;;  %v245_v2 = vld [vmem:[%s756_s6 + $0xa0] sm:$0xff] }
  0x20   : > { %367 = vst [vmem:[%s799_s10] sm:$0xff] %v335_v27  ;;  %368 = vst [vmem:[%s799_s10 + $0x8] sm:$0xff] %v336_v28  ;;  %v341_v39 = vmax.f32 %v309_v30, 0.0  ;;  %v272_v40 = vmul.f32 %v751_v0, %v233_v24  ;;  %v273_v41 = vmul.f32 %v751_v0, %v234_v25  ;;  %v274_v42 = vmul.f32 %v751_v0, %v235_v26  ;;  %v246_v3 = vld [vmem:[%s756_s6 + $0xa8] sm:$0xff]  ;;  %v247_v8 = vld [vmem:[%s756_s6 + $0xb0] sm:$0xff]  ;;  %p598_p5 = pnand %p597_p3, %p591_p0 }
  0x21   : > { %369 = vst [vmem:[%s799_s10 + $0x10] sm:$0xff] %v337_v29  ;;  %370 = vst [vmem:[%s799_s10 + $0x18] sm:$0xff] %v338_v34  ;;  %v342_v44 = vmax.f32 %v310_v37, 0.0  ;;  %v275_v45 = vmul.f32 %v751_v0, %v236_v31  ;;  %v276_v46 = vmul.f32 %v751_v0, %v237_v32  ;;  %v277_v47 = vmul.f32 %v751_v0, %v238_v33  ;;  %v248_v13 = vld [vmem:[%s756_s6 + $0xb8] sm:$0xff]  ;;  %v249_v26 = vld [vmem:[%s756_s6 + $0xc0] sm:$0xff] }
  0x22   : > { %371 = vst [vmem:[%s799_s10 + $0x20] sm:$0xff] %v339_v35  ;;  %372 = vst [vmem:[%s799_s10 + $0x28] sm:$0xff] %v340_v36  ;;  %v311_v48 = vadd.f32 %v761_v1, %v272_v40  ;;  %v312_v49 = vadd.f32 %v761_v1, %v273_v41  ;;  %v313_v50 = vadd.f32 %v761_v1, %v274_v42  ;;  %v250_v27 = vld [vmem:[%s756_s6 + $0xc8] sm:$0xff]  ;;  %v251_v28 = vld [vmem:[%s756_s6 + $0xd0] sm:$0xff] }
  0x23   : > { %373 = vst [vmem:[%s799_s10 + $0x30] sm:$0xff] %v341_v39  ;;  %v278_v51 = vmul.f32 %v751_v0, %v239_v38  ;;  %374 = vst [vmem:[%s799_s10 + $0x38] sm:$0xff] %v342_v44  ;;  %v314_v52 = vadd.f32 %v761_v1, %v275_v45  ;;  %v315_v53 = vadd.f32 %v761_v1, %v276_v46  ;;  %v252_v33 = vld [vmem:[%s756_s6 + $0xd8] sm:$0xff]  ;;  %v253_v34 = vld [vmem:[%s756_s6 + $0xe0] sm:$0xff] }
  0x24   : > { %v316_v54 = vadd.f32 %v761_v1, %v277_v47  ;;  %v279_v55 = vmul.f32 %v751_v0, %v240_v43  ;;  %v343_v59 = vmax.f32 %v311_v48, 0.0  ;;  %v344_v60 = vmax.f32 %v312_v49, 0.0  ;;  %v254_v35 = vld [vmem:[%s756_s6 + $0xe8] sm:$0xff]  ;;  %v255_v40 = vld [vmem:[%s756_s6 + $0xf0] sm:$0xff]  ;;  %v256_v45 = vld [vmem:[%s756_s6 + $0xf8] sm:$0xff] }
  0x25   : > { %v345_v61 = vmax.f32 %v313_v50, 0.0  ;;  %v317_v62 = vadd.f32 %v761_v1, %v278_v51  ;;  %v346_v4 = vmax.f32 %v314_v52, 0.0  ;;  %v347_v5 = vmax.f32 %v315_v53, 0.0 }
  0x26   : > { %v348_v6 = vmax.f32 %v316_v54, 0.0  ;;  %v318_v7 = vadd.f32 %v761_v1, %v279_v55  ;;  %375 = vst [vmem:[%s799_s10 + $0x40] sm:$0xff] %v343_v59  ;;  %376 = vst [vmem:[%s799_s10 + $0x48] sm:$0xff] %v344_v60  ;;  %v280_v10 = vmul.f32 %v751_v0, %v241_v56  ;;  %v281_v11 = vmul.f32 %v751_v0, %v242_v57 }
  0x27   : > { %377 = vst [vmem:[%s799_s10 + $0x50] sm:$0xff] %v345_v61  ;;  %v349_v9 = vmax.f32 %v317_v62, 0.0  ;;  %v282_v12 = vmul.f32 %v751_v0, %v243_v58  ;;  %378 = vst [vmem:[%s799_s10 + $0x58] sm:$0xff] %v346_v4  ;;  %v283_v15 = vmul.f32 %v751_v0, %v244_v63  ;;  %v284_v16 = vmul.f32 %v751_v0, %v245_v2 }
  0x28   : > { %379 = vst [vmem:[%s799_s10 + $0x60] sm:$0xff] %v347_v5  ;;  %380 = vst [vmem:[%s799_s10 + $0x68] sm:$0xff] %v348_v6  ;;  %v350_v14 = vmax.f32 %v318_v7, 0.0  ;;  %v285_v17 = vmul.f32 %v751_v0, %v246_v3  ;;  %v319_v18 = vadd.f32 %v761_v1, %v280_v10  ;;  %v320_v19 = vadd.f32 %v761_v1, %v281_v11 }
  0x29   : > { %381 = vst [vmem:[%s799_s10 + $0x70] sm:$0xff] %v349_v9  ;;  %v321_v20 = vadd.f32 %v761_v1, %v282_v12  ;;  %v286_v21 = vmul.f32 %v751_v0, %v247_v8  ;;  %v322_v22 = vadd.f32 %v761_v1, %v283_v15  ;;  %v323_v23 = vadd.f32 %v761_v1, %v284_v16 }
  0x2a   : > { %382 = vst [vmem:[%s799_s10 + $0x78] sm:$0xff] %v350_v14  ;;  %v324_v24 = vadd.f32 %v761_v1, %v285_v17  ;;  %v287_v25 = vmul.f32 %v751_v0, %v248_v13  ;;  %v351_v29 = vmax.f32 %v319_v18, 0.0  ;;  %v352_v30 = vmax.f32 %v320_v19, 0.0 }
  0x2b   : > { %v353_v31 = vmax.f32 %v321_v20, 0.0  ;;  %v325_v32 = vadd.f32 %v761_v1, %v286_v21  ;;  %v354_v36 = vmax.f32 %v322_v22, 0.0  ;;  %v355_v37 = vmax.f32 %v323_v23, 0.0 }
  0x2c   : > { %v356_v38 = vmax.f32 %v324_v24, 0.0  ;;  %v326_v39 = vadd.f32 %v761_v1, %v287_v25  ;;  %383 = vst [vmem:[%s799_s10 + $0x80] sm:$0xff] %v351_v29  ;;  %384 = vst [vmem:[%s799_s10 + $0x88] sm:$0xff] %v352_v30  ;;  %v288_v42 = vmul.f32 %v751_v0, %v249_v26  ;;  %v289_v43 = vmul.f32 %v751_v0, %v250_v27 }
  0x2d   : > { %385 = vst [vmem:[%s799_s10 + $0x90] sm:$0xff] %v353_v31  ;;  %v357_v41 = vmax.f32 %v325_v32, 0.0  ;;  %v290_v44 = vmul.f32 %v751_v0, %v251_v28  ;;  %386 = vst [vmem:[%s799_s10 + $0x98] sm:$0xff] %v354_v36  ;;  %v291_v47 = vmul.f32 %v751_v0, %v252_v33  ;;  %v292_v48 = vmul.f32 %v751_v0, %v253_v34 }
  0x2e   : > { %387 = vst [vmem:[%s799_s10 + $0xa0] sm:$0xff] %v355_v37  ;;  %388 = vst [vmem:[%s799_s10 + $0xa8] sm:$0xff] %v356_v38  ;;  %v358_v46 = vmax.f32 %v326_v39, 0.0  ;;  %v293_v49 = vmul.f32 %v751_v0, %v254_v35  ;;  %v327_v50 = vadd.f32 %v761_v1, %v288_v42  ;;  %v328_v51 = vadd.f32 %v761_v1, %v289_v43 }
  0x2f   : > { %389 = vst [vmem:[%s799_s10 + $0xb0] sm:$0xff] %v357_v41  ;;  %v329_v52 = vadd.f32 %v761_v1, %v290_v44  ;;  %v294_v53 = vmul.f32 %v751_v0, %v255_v40  ;;  %v330_v54 = vadd.f32 %v761_v1, %v291_v47  ;;  %v331_v55 = vadd.f32 %v761_v1, %v292_v48 }
  0x30   : > { %390 = vst [vmem:[%s799_s10 + $0xb8] sm:$0xff] %v358_v46  ;;  %v332_v56 = vadd.f32 %v761_v1, %v293_v49  ;;  %v295_v57 = vmul.f32 %v751_v0, %v256_v45  ;;  %v359_v58 = vmax.f32 %v327_v50, 0.0  ;;  %v360_v59 = vmax.f32 %v328_v51, 0.0 }
  0x31   : > { %v361_v60 = vmax.f32 %v329_v52, 0.0  ;;  %v333_v61 = vadd.f32 %v761_v1, %v294_v53  ;;  %v362_v62 = vmax.f32 %v330_v54, 0.0  ;;  %v363_v63 = vmax.f32 %v331_v55, 0.0 }
  0x32   : > { %v364_v2 = vmax.f32 %v332_v56, 0.0  ;;  %v334_v3 = vadd.f32 %v761_v1, %v295_v57  ;;  %391 = vst [vmem:[%s799_s10 + $0xc0] sm:$0xff] %v359_v58  ;;  %392 = vst [vmem:[%s799_s10 + $0xc8] sm:$0xff] %v360_v59 }
  0x33   : > { %393 = vst [vmem:[%s799_s10 + $0xd0] sm:$0xff] %v361_v60  ;;  %v365_v0 = vmax.f32 %v333_v61, 0.0  ;;  %394 = vst [vmem:[%s799_s10 + $0xd8] sm:$0xff] %v362_v62 }
  0x34   : > { %395 = vst [vmem:[%s799_s10 + $0xe0] sm:$0xff] %v363_v63  ;;  %396 = vst [vmem:[%s799_s10 + $0xe8] sm:$0xff] %v364_v2  ;;  %v366_v4 = vmax.f32 %v334_v3, 0.0 }
  0x35   : > { %397 = vst [vmem:[%s799_s10 + $0xf0] sm:$0xff] %v365_v0 }
  0x36   : > { %398 = vst [vmem:[%s799_s10 + $0xf8] sm:$0xff] %v366_v4 }
  0x37   : > { %601 = shalt.err (!%p598_p5)
}
  0x38   : > { %s602_s27 = scalar_lea.hbm %s898_s21, 4096  ;;  %s606_s6 = scalar_lea.hbm %s958_s3, 8192 }
  0x39   : > { %p603_p6 = scmp.ne.s32.totalorder %s898_s21, %s602_s27  ;;  %p607_p10 = scmp.lt.u32.totalorder %s898_s21, %s958_s3 }
  0x3a   : > { %p608_p11 = scmp.lt.u32.totalorder %s606_s6, %s602_s27  ;;  %p610_p13 = scmp.lt.u32.totalorder %s602_s27, %s898_s21 }
  0x3b   : > { %p604_p7 = pnand %p603_p6, %p731_p4 }
  0x3c   : > { %p609_p12 = por %p608_p11, %p607_p10 }
  0x3d   : > { %p605_p9 = pneg %p604_p7 }
  0x3e   : > { %p611_p0 = por %p610_p13, %p609_p12 }
  0x40   : > { %p612_p1 = pnand %p611_p0, %p605_p9 }
  0x42   : > { %615 = shalt.err (!%p612_p1)
}
  0x43   : > { %s669_s9 = smov 128   ;;  %s670_s10 = smov 8  }
  0x44   : > { %531 = dma.vmem_to_hbm [thread:$0]  (%p731_p4), %s900_s18, 4096, %s898_s21, %s909_s23, %s669_s9, %s669_s9, %s670_s10  }
  0x45 PF: > { %p537_p2 = scmp.ge.s32.totalorder %s666_s17, 2  ;;  %s429_s11 = sand.u32 1, %s646_s12  }
  0x46   : > { %s430_s15 = scalar_lea.sflag [#allocation3], %s429_s11 }
  0x47   : > { %p534_p3 = pnand %p537_p2, %p738_p8 }
  0x49   : > { %641 = dma.done.wait (!%p534_p3), %s430_s15, 4096  }
  0x4a   : > { %643 = vsyncadd (!%p534_p3), %s430_s15, 4294963200  ;;  %s16_s17 = sadd.s32 1, %s666_s17   ;;  %s961_s12 = smov %s650_s13 }
  0x4b   : > { %p13_p5 = scmp.ge.s32.totalorder %s16_s17, 4   ;;  %s962_s13 = smov %s654_s14 }
  0x4c   : > { %s963_s14 = smov %s744_s25  ;;  %s964_s15 = smov %s662_s16 }
  0x4d   : > { %s965_s16 = smov %s967_s20  ;;  %15 = sbr.rel (!%p13_p5) target bundleno = 4 (0x4), region = 73 }
  0x54   :  { %435 = vsyncpa [#allocation3], 1 }
  0x55   :  { %437 = vsyncpa [#allocation3 + $0x1], 1 }

// kernel: conv_bn.2
= control target key start
LH: loop header
LB: loop body
LE: loop exit
PB: predicated region body
PF: predicated region fallthrough
CT: control target
= control target key end

     0   :  { %s1601_s15 = smov 0   ;;  %s1603_s16 = smov 0   ;;  %s1852_s0 = inlined_call_operand.vmem [shape: bf16[512,256], index: 0, kind: input, shape index: {}]   ;;  %s1853_s1 = inlined_call_operand.vmem [shape: bf16[256,128], index: 1, kind: input, shape index: {}]   ;;  %s1854_s2 = inlined_call_operand.vmem [shape: f32[512,128], index: 2, kind: output, shape index: {0}]   ;;  %s1855_s3 = inlined_call_operand.vmem [shape: f32[2,1,128], index: 3, kind: output, shape index: {1}]   ;;  %s1856_s4 = inlined_call_operand.vmem [shape: f32[2,1,128], index: 4, kind: output, shape index: {2}]  }
   0x1   :  { %s1605_s17 = smov 0  }
   0x2 LB: > { %s34_s18 = sadd.s32 1, %s1570_s16  ;;  %p1279_p0 = scmp.ge.s32.totalorder %s1574_s17, 1  ;;  %s1574_s17 = sphi %s1605_s17, %s15_s17   ;;  %s1570_s16 = sphi %s1603_s16, %s1858_s16   ;;  %s1566_s15 = sphi %s1601_s15, %s1857_s15  }
   0x3   : > { %p36_p1 = scmp.ge.s32.totalorder %s34_s18, 2  ;;  %p217_p2 = scmp.lt.s32.totalorder %s1574_s17, 3 }
   0x5   : > { %s1860_s18 = smov (%p36_p1, %s34_s18), 0  ;;  %p218_p3 = pnand %p1279_p0, %p217_p2 }
   0x6   : > { %v1488_v0 = vld [vmem:[%s1853_s1 + $0x40] sm:$0xff] (!%p218_p3)   ;;  %s1280_s21 = sshll.u32 (!%p218_p3), %s1566_s15, 5  ;;  %v1490_v2 = vld [vmem:[%s1853_s1 + $0x48] sm:$0xff] (!%p218_p3)   ;;  %v1492_v4 = vld [vmem:[%s1853_s1 + $0x50] sm:$0xff] (!%p218_p3)   ;;  %p301_p5 = scmp.lt.s32.totalorder (!%p218_p3), %s1566_s15, 1 }
   0x7   : > { %221 = sbr.rel (%p218_p3) target bundleno = 361 (0x169), region = 28  ;;  %v1489_v1 = vld [vmem:[%s1853_s1] sm:$0xff] (!%p218_p3)   ;;  %1336 = vmatprep.subr.bf16.mxu0 (!%p218_p3), %v1488_v0  ;;  %1448 = vmatprep.subr.bf16.mxu1 (!%p218_p3), %v1488_v0  ;;  %v1491_v3 = vld [vmem:[%s1853_s1 + $0x8] sm:$0xff] (!%p218_p3)   ;;  %p273_p4 = scmp.lt.s32.totalorder (!%p218_p3), %s1280_s21, 63  ;;  %v1493_v5 = vld [vmem:[%s1853_s1 + $0x10] sm:$0xff] (!%p218_p3)  }
   0x8   : > { %1337 = vmatpush3.bf16.msra.mxu0 (!%p218_p3), %v1489_v1  ;;  %1456 = vmatpush3.bf16.msra.mxu1 (!%p218_p3), %v1489_v1  ;;  %v1494_v6 = vld [vmem:[%s1853_s1 + $0x58] sm:$0xff] (!%p218_p3)   ;;  %v1496_v8 = vld [vmem:[%s1853_s1 + $0x60] sm:$0xff] (!%p218_p3)   ;;  %v1498_v10 = vld [vmem:[%s1853_s1 + $0x68] sm:$0xff] (!%p218_p3)  }
   0x9   : > { %1338 = vmatprep.subr.bf16.mxu0 (!%p218_p3), %v1490_v2  ;;  %1449 = vmatprep.subr.bf16.mxu1 (!%p218_p3), %v1490_v2  ;;  %v1495_v7 = vld [vmem:[%s1853_s1 + $0x18] sm:$0xff] (!%p218_p3)   ;;  %v1497_v9 = vld [vmem:[%s1853_s1 + $0x20] sm:$0xff] (!%p218_p3)   ;;  %v1499_v12 = vld [vmem:[%s1853_s1 + $0x28] sm:$0xff] (!%p218_p3)  }
   0xa   : > { %v1500_v13 = vld [vmem:[%s1853_s1 + $0x70] sm:$0xff] (!%p218_p3)   ;;  %v1502_v16 = vld [vmem:[%s1853_s1 + $0x78] sm:$0xff] (!%p218_p3)  }
   0xb   : > { %v1501_v15 = vld [vmem:[%s1853_s1 + $0x30] sm:$0xff] (!%p218_p3)   ;;  %v1503_v17 = vld [vmem:[%s1853_s1 + $0x38] sm:$0xff] (!%p218_p3)  }
   0xc   : > { %1339 = vmatpush3.bf16.msra.mxu0 (!%p218_p3), %v1491_v3  ;;  %1457 = vmatpush3.bf16.msra.mxu1 (!%p218_p3), %v1491_v3 }
   0xd   : > { %1340 = vmatprep.subr.bf16.mxu0 (!%p218_p3), %v1492_v4  ;;  %1450 = vmatprep.subr.bf16.mxu1 (!%p218_p3), %v1492_v4 }
   0xe   : > { %s1862_s21 = smov (!%p273_p4, %s1280_s21), 63  ;;  %s1864_s15 = smov (!%p301_p5, %s1566_s15), 1 }
   0xf   : > { %s1335_s10 = sshll.u32 %s1862_s21, 3  ;;  %s306_s13 = scalar_lea.vmem %s1855_s3, %s1864_s15 }
  0x10   : > { %1341 = vmatpush3.bf16.msra.mxu0 %v1493_v5  ;;  %1458 = vmatpush3.bf16.msra.mxu1 %v1493_v5  ;;  %s1657_s19 = scalar_lea.vmem %s1852_s0, %s1335_s10  ;;  %s1717_s12 = scalar_lea.vmem %s1854_s2, %s1335_s10 }
  0x11   : > { %1342 = vmatprep.subr.bf16.mxu0 %v1494_v6  ;;  %1451 = vmatprep.subr.bf16.mxu1 %v1494_v6  ;;  %v1506_v11 = vld [vmem:[%s1657_s19 + $0x4] ss:$8 sps:$4 sm:$0xff]   ;;  %v1504_v18 = vld [vmem:[%s1657_s19] ss:$8 sps:$4 sm:$0xff]   ;;  %v1507_v19 = vld [vmem:[%s1657_s19 + $0x14] ss:$8 sps:$4 sm:$0xff]   ;;  %s312_s20 = scalar_lea.vmem %s1856_s4, %s1864_s15 }
  0x12   : > { %734 = vmatprep.mubr.bf16.mxu0 %v1506_v11  ;;  %v1518_v14 = vld [vmem:[%s1657_s19 + $0x84] ss:$8 sps:$4 sm:$0xff]   ;;  %v1516_v20 = vld [vmem:[%s1657_s19 + $0x80] ss:$8 sps:$4 sm:$0xff]   ;;  %v1522_v21 = vld [vmem:[%s1657_s19 + $0x94] ss:$8 sps:$4 sm:$0xff]  }
  0x13   : > { %798 = vmatprep.mubr.bf16.mxu1 %v1518_v14  ;;  %v1509_v22 = vld [vmem:[%s1657_s19 + $0x10] ss:$8 sps:$4 sm:$0xff]   ;;  %v1510_v23 = vld [vmem:[%s1657_s19 + $0x24] ss:$8 sps:$4 sm:$0xff]   ;;  %v1512_v26 = vld [vmem:[%s1657_s19 + $0x20] ss:$8 sps:$4 sm:$0xff]  }
  0x14   : > { %1343 = vmatpush3.bf16.msra.mxu0 %v1495_v7  ;;  %1459 = vmatpush3.bf16.msra.mxu1 %v1495_v7  ;;  %v1524_v24 = vld [vmem:[%s1657_s19 + $0x90] ss:$8 sps:$4 sm:$0xff]   ;;  %v1528_v25 = vld [vmem:[%s1657_s19 + $0xa4] ss:$8 sps:$4 sm:$0xff]   ;;  %v1513_v27 = vld [vmem:[%s1657_s19 + $0x34] ss:$8 sps:$4 sm:$0xff]  }
  0x15   : > { %1344 = vmatprep.subr.bf16.mxu0 %v1496_v8  ;;  %1452 = vmatprep.subr.bf16.mxu1 %v1496_v8  ;;  %v1530_v28 = vld [vmem:[%s1657_s19 + $0xa0] ss:$8 sps:$4 sm:$0xff]   ;;  %v1534_v29 = vld [vmem:[%s1657_s19 + $0xb4] ss:$8 sps:$4 sm:$0xff]   ;;  %v1515_v30 = vld [vmem:[%s1657_s19 + $0x30] ss:$8 sps:$4 sm:$0xff]  }
  0x16   : > { %v1519_v31 = vld [vmem:[%s1657_s19 + $0x44] ss:$8 sps:$4 sm:$0xff]   ;;  %v1536_v32 = vld [vmem:[%s1657_s19 + $0xb0] ss:$8 sps:$4 sm:$0xff]   ;;  %v1521_v34 = vld [vmem:[%s1657_s19 + $0x40] ss:$8 sps:$4 sm:$0xff]  }
  0x17   : > { %v1540_v33 = vld [vmem:[%s1657_s19 + $0xc4] ss:$8 sps:$4 sm:$0xff]   ;;  %v1525_v35 = vld [vmem:[%s1657_s19 + $0x54] ss:$8 sps:$4 sm:$0xff]   ;;  %v1542_v36 = vld [vmem:[%s1657_s19 + $0xc0] ss:$8 sps:$4 sm:$0xff]  }
  0x18   : > { %1345 = vmatpush3.bf16.msra.mxu0 %v1497_v9  ;;  %1460 = vmatpush3.bf16.msra.mxu1 %v1497_v9  ;;  %v1543_v37 = vld [vmem:[%s1657_s19 + $0xd4] ss:$8 sps:$4 sm:$0xff]   ;;  %v1527_v38 = vld [vmem:[%s1657_s19 + $0x50] ss:$8 sps:$4 sm:$0xff]   ;;  %v1531_v39 = vld [vmem:[%s1657_s19 + $0x64] ss:$8 sps:$4 sm:$0xff]  }
  0x19   : > { %1346 = vmatprep.subr.bf16.mxu0 %v1498_v10  ;;  %1453 = vmatprep.subr.bf16.mxu1 %v1498_v10  ;;  %v1545_v40 = vld [vmem:[%s1657_s19 + $0xd0] ss:$8 sps:$4 sm:$0xff]   ;;  %v1546_v41 = vld [vmem:[%s1657_s19 + $0xe4] ss:$8 sps:$4 sm:$0xff]   ;;  %v1533_v42 = vld [vmem:[%s1657_s19 + $0x60] ss:$8 sps:$4 sm:$0xff]  }
  0x1a   : > { %v1537_v43 = vld [vmem:[%s1657_s19 + $0x74] ss:$8 sps:$4 sm:$0xff]   ;;  %v1548_v44 = vld [vmem:[%s1657_s19 + $0xe0] ss:$8 sps:$4 sm:$0xff]   ;;  %v1539_v46 = vld [vmem:[%s1657_s19 + $0x70] ss:$8 sps:$4 sm:$0xff]  }
  0x1b   : > { %v1549_v45 = vld [vmem:[%s1657_s19 + $0xf4] ss:$8 sps:$4 sm:$0xff]   ;;  %v1551_v47 = vld [vmem:[%s1657_s19 + $0xf0] ss:$8 sps:$4 sm:$0xff]  }
  0x1c   : > { %1347 = vmatpush3.bf16.msra.mxu0 %v1499_v12  ;;  %1461 = vmatpush3.bf16.msra.mxu1 %v1499_v12 }
  0x1d   : > { %1348 = vmatprep.subr.bf16.mxu0 %v1500_v13  ;;  %1454 = vmatprep.subr.bf16.mxu1 %v1500_v13 }
  0x20   : > { %1349 = vmatpush3.bf16.msra.mxu0 %v1501_v15  ;;  %1462 = vmatpush3.bf16.msra.mxu1 %v1501_v15 }
  0x21   : > { %1350 = vmatprep.subr.bf16.mxu0 %v1502_v16  ;;  %1455 = vmatprep.subr.bf16.mxu1 %v1502_v16 }
  0x24   : > { %1351 = vmatpush3.bf16.msra.mxu0 %v1503_v17  ;;  %1463 = vmatpush3.bf16.msra.mxu1 %v1503_v17 }
  0x27   : > { %735 = vmatmul.mubr.bf16.vlgmr.msra.gmra.mrb[0].mxu0 %v1504_v18  ;;  %799 = vmatmul.mubr.bf16.vlgmr.msra.gmra.mrb[0].mxu1 %v1516_v20 }
  0x28   : > { %742 = vmatprep.mubr.bf16.mxu0 %v1507_v19  ;;  %806 = vmatprep.mubr.bf16.mxu1 %v1522_v21 }
  0x2f   : > { %743 = vmatmul.mubr.bf16.gmra.mrb[4].mxu0 %v1509_v22  ;;  %807 = vmatmul.mubr.bf16.gmra.mrb[4].mxu1 %v1524_v24 }
  0x30   : > { %750 = vmatprep.mubr.bf16.mxu0 %v1510_v23  ;;  %814 = vmatprep.mubr.bf16.mxu1 %v1528_v25 }
  0x37   : > { %751 = vmatmul.mubr.bf16.gmra.mrb[8].mxu0 %v1512_v26  ;;  %815 = vmatmul.mubr.bf16.gmra.mrb[8].mxu1 %v1530_v28 }
  0x38   : > { %758 = vmatprep.mubr.bf16.mxu0 %v1513_v27  ;;  %822 = vmatprep.mubr.bf16.mxu1 %v1534_v29 }
  0x3f   : > { %759 = vmatmul.mubr.bf16.gmra.mrb[12].mxu0 %v1515_v30  ;;  %823 = vmatmul.mubr.bf16.gmra.mrb[12].mxu1 %v1536_v32 }
  0x40   : > { %766 = vmatprep.mubr.bf16.mxu0 %v1519_v31  ;;  %830 = vmatprep.mubr.bf16.mxu1 %v1540_v33 }
  0x47   : > { %767 = vmatmul.mubr.bf16.gmra.mrb[16].mxu0 %v1521_v34  ;;  %831 = vmatmul.mubr.bf16.gmra.mrb[16].mxu1 %v1542_v36 }
  0x48   : > { %774 = vmatprep.mubr.bf16.mxu0 %v1525_v35  ;;  %838 = vmatprep.mubr.bf16.mxu1 %v1543_v37 }
  0x4f   : > { %775 = vmatmul.mubr.bf16.gmra.mrb[20].mxu0 %v1527_v38  ;;  %839 = vmatmul.mubr.bf16.gmra.mrb[20].mxu1 %v1545_v40 }
  0x50   : > { %782 = vmatprep.mubr.bf16.mxu0 %v1531_v39  ;;  %846 = vmatprep.mubr.bf16.mxu1 %v1546_v41 }
  0x57   : > { %783 = vmatmul.mubr.bf16.gmra.mrb[24].mxu0 %v1533_v42  ;;  %847 = vmatmul.mubr.bf16.gmra.mrb[24].mxu1 %v1548_v44 }
  0x58   : > { %790 = vmatprep.mubr.bf16.mxu0 %v1537_v43  ;;  %854 = vmatprep.mubr.bf16.mxu1 %v1549_v45 }
  0x5f   : > { %791 = vmatmul.mubr.bf16.gmra.mrb[28].mxu0 %v1539_v46  ;;  %855 = vmatmul.mubr.bf16.gmra.mrb[28].mxu1 %v1551_v47 }
  0xfa   : > { %v1352_v48 = vpop.f32.mrb[0].mxu0  ;;  %v1400_v50 = vpop.f32.mrb[0].mxu1 }
  0xfb   : > { %v1353_v49 = vpop.f32.mrb[1].mxu0  ;;  %v1401_v53 = vpop.f32.mrb[1].mxu1 }
  0xfc   : > { %v1354_v51 = vadd.f32 %v1353_v49, %v1352_v48  ;;  %v1355_v52 = vpop.f32.mrb[2].mxu0  ;;  %v1719_v55 = vadd.f32 %v1401_v53, %v1400_v50  ;;  %v1403_v56 = vpop.f32.mrb[2].mxu1 }
  0xfd   : > { %v1356_v54 = vpop.f32.mrb[3].mxu0  ;;  %v1404_v58 = vpop.f32.mrb[3].mxu1 }
  0xfe   : > { %962 = vst [vmem:[%s1717_s12] sm:$0xff] %v1354_v51  ;;  %v1357_v57 = vadd.f32 %v1356_v54, %v1355_v52  ;;  %978 = vst [vmem:[%s1717_s12 + $0x80] sm:$0xff] %v1719_v55  ;;  %v1724_v59 = vadd.f32 %v1404_v58, %v1403_v56  ;;  %v1032_v60 = vmul.f32 %v1354_v51, %v1354_v51 }
 0x100   : > { %963 = vst [vmem:[%s1717_s12 + $0x8] sm:$0xff] %v1357_v57  ;;  %v994_v61 = vadd.f32 %v1357_v57, %v1354_v51  ;;  %v1033_v62 = vmul.f32 %v1357_v57, %v1357_v57  ;;  %979 = vst [vmem:[%s1717_s12 + $0x88] sm:$0xff] %v1724_v59 }
 0x102   : > { %v1064_v63 = vadd.f32 %v1033_v62, %v1032_v60  ;;  %v1358_v0 = vpop.f32.mrb[4].mxu0  ;;  %v1406_v2 = vpop.f32.mrb[4].mxu1 }
 0x103   : > { %v1359_v1 = vpop.f32.mrb[5].mxu0  ;;  %v1407_v5 = vpop.f32.mrb[5].mxu1 }
 0x104   : > { %v1360_v3 = vadd.f32 %v1359_v1, %v1358_v0  ;;  %v1361_v4 = vpop.f32.mrb[6].mxu0  ;;  %v1729_v7 = vadd.f32 %v1407_v5, %v1406_v2  ;;  %v1409_v8 = vpop.f32.mrb[6].mxu1 }
 0x105   : > { %v1362_v6 = vpop.f32.mrb[7].mxu0  ;;  %v1410_v12 = vpop.f32.mrb[7].mxu1 }
 0x106   : > { %964 = vst [vmem:[%s1717_s12 + $0x10] sm:$0xff] %v1360_v3  ;;  %v995_v9 = vadd.f32 %v1360_v3, %v994_v61  ;;  %v1034_v10 = vmul.f32 %v1360_v3, %v1360_v3  ;;  %v1363_v11 = vadd.f32 %v1362_v6, %v1361_v4  ;;  %980 = vst [vmem:[%s1717_s12 + $0x90] sm:$0xff] %v1729_v7 }
 0x107   : > { %v1734_v13 = vadd.f32 %v1410_v12, %v1409_v8 }
 0x108   : > { %v1065_v14 = vadd.f32 %v1064_v63, %v1034_v10  ;;  %965 = vst [vmem:[%s1717_s12 + $0x18] sm:$0xff] %v1363_v11  ;;  %v996_v15 = vadd.f32 %v1363_v11, %v995_v9  ;;  %v1035_v16 = vmul.f32 %v1363_v11, %v1363_v11 }
 0x109   : > { %981 = vst [vmem:[%s1717_s12 + $0x98] sm:$0xff] %v1734_v13 }
 0x10a   : > { %v1066_v17 = vadd.f32 %v1065_v14, %v1035_v16  ;;  %v1364_v18 = vpop.f32.mrb[8].mxu0  ;;  %v1412_v20 = vpop.f32.mrb[8].mxu1 }
 0x10b   : > { %v1365_v19 = vpop.f32.mrb[9].mxu0  ;;  %v1413_v23 = vpop.f32.mrb[9].mxu1 }
 0x10c   : > { %v1366_v21 = vadd.f32 %v1365_v19, %v1364_v18  ;;  %v1367_v22 = vpop.f32.mrb[10].mxu0  ;;  %v1739_v25 = vadd.f32 %v1413_v23, %v1412_v20  ;;  %v1415_v26 = vpop.f32.mrb[10].mxu1 }
 0x10d   : > { %v1368_v24 = vpop.f32.mrb[11].mxu0  ;;  %v1416_v30 = vpop.f32.mrb[11].mxu1 }
 0x10e   : > { %966 = vst [vmem:[%s1717_s12 + $0x20] sm:$0xff] %v1366_v21  ;;  %v997_v27 = vadd.f32 %v1366_v21, %v996_v15  ;;  %v1036_v28 = vmul.f32 %v1366_v21, %v1366_v21  ;;  %v1369_v29 = vadd.f32 %v1368_v24, %v1367_v22  ;;  %982 = vst [vmem:[%s1717_s12 + $0xa0] sm:$0xff] %v1739_v25 }
 0x10f   : > { %v1744_v31 = vadd.f32 %v1416_v30, %v1415_v26 }
 0x110   : > { %v1067_v32 = vadd.f32 %v1066_v17, %v1036_v28  ;;  %967 = vst [vmem:[%s1717_s12 + $0x28] sm:$0xff] %v1369_v29  ;;  %v998_v33 = vadd.f32 %v1369_v29, %v997_v27  ;;  %v1037_v34 = vmul.f32 %v1369_v29, %v1369_v29 }
 0x111   : > { %983 = vst [vmem:[%s1717_s12 + $0xa8] sm:$0xff] %v1744_v31 }
 0x112   : > { %v1068_v35 = vadd.f32 %v1067_v32, %v1037_v34  ;;  %v1370_v36 = vpop.f32.mrb[12].mxu0  ;;  %v1418_v38 = vpop.f32.mrb[12].mxu1 }
 0x113   : > { %v1371_v37 = vpop.f32.mrb[13].mxu0  ;;  %v1419_v41 = vpop.f32.mrb[13].mxu1 }
 0x114   : > { %v1372_v39 = vadd.f32 %v1371_v37, %v1370_v36  ;;  %v1373_v40 = vpop.f32.mrb[14].mxu0  ;;  %v1749_v43 = vadd.f32 %v1419_v41, %v1418_v38  ;;  %v1421_v44 = vpop.f32.mrb[14].mxu1 }
 0x115   : > { %v1374_v42 = vpop.f32.mrb[15].mxu0  ;;  %v1422_v48 = vpop.f32.mrb[15].mxu1 }
 0x116   : > { %968 = vst [vmem:[%s1717_s12 + $0x30] sm:$0xff] %v1372_v39  ;;  %v999_v45 = vadd.f32 %v1372_v39, %v998_v33  ;;  %v1038_v46 = vmul.f32 %v1372_v39, %v1372_v39  ;;  %v1375_v47 = vadd.f32 %v1374_v42, %v1373_v40  ;;  %984 = vst [vmem:[%s1717_s12 + $0xb0] sm:$0xff] %v1749_v43 }
 0x117   : > { %v1754_v49 = vadd.f32 %v1422_v48, %v1421_v44 }
 0x118   : > { %v1069_v50 = vadd.f32 %v1068_v35, %v1038_v46  ;;  %969 = vst [vmem:[%s1717_s12 + $0x38] sm:$0xff] %v1375_v47  ;;  %v1000_v51 = vadd.f32 %v1375_v47, %v999_v45  ;;  %v1039_v52 = vmul.f32 %v1375_v47, %v1375_v47 }
 0x119   : > { %985 = vst [vmem:[%s1717_s12 + $0xb8] sm:$0xff] %v1754_v49 }
 0x11a   : > { %v1070_v53 = vadd.f32 %v1069_v50, %v1039_v52  ;;  %v1376_v54 = vpop.f32.mrb[16].mxu0  ;;  %v1424_v57 = vpop.f32.mrb[16].mxu1 }
 0x11b   : > { %v1377_v56 = vpop.f32.mrb[17].mxu0  ;;  %v1425_v61 = vpop.f32.mrb[17].mxu1 }
 0x11c   : > { %v1378_v58 = vadd.f32 %v1377_v56, %v1376_v54  ;;  %v1379_v60 = vpop.f32.mrb[18].mxu0  ;;  %v1759_v63 = vadd.f32 %v1425_v61, %v1424_v57  ;;  %v1427_v0 = vpop.f32.mrb[18].mxu1 }
 0x11d   : > { %v1380_v62 = vpop.f32.mrb[19].mxu0  ;;  %v1428_v4 = vpop.f32.mrb[19].mxu1 }
 0x11e   : > { %970 = vst [vmem:[%s1717_s12 + $0x40] sm:$0xff] %v1378_v58  ;;  %v1001_v1 = vadd.f32 %v1378_v58, %v1000_v51  ;;  %v1040_v2 = vmul.f32 %v1378_v58, %v1378_v58  ;;  %v1381_v3 = vadd.f32 %v1380_v62, %v1379_v60  ;;  %986 = vst [vmem:[%s1717_s12 + $0xc0] sm:$0xff] %v1759_v63 }
 0x11f   : > { %v1764_v5 = vadd.f32 %v1428_v4, %v1427_v0 }
 0x120   : > { %v1071_v6 = vadd.f32 %v1070_v53, %v1040_v2  ;;  %971 = vst [vmem:[%s1717_s12 + $0x48] sm:$0xff] %v1381_v3  ;;  %v1002_v8 = vadd.f32 %v1381_v3, %v1001_v1  ;;  %v1041_v9 = vmul.f32 %v1381_v3, %v1381_v3 }
 0x121   : > { %987 = vst [vmem:[%s1717_s12 + $0xc8] sm:$0xff] %v1764_v5 }
 0x122   : > { %v1072_v10 = vadd.f32 %v1071_v6, %v1041_v9  ;;  %v1382_v11 = vpop.f32.mrb[20].mxu0  ;;  %v1430_v14 = vpop.f32.mrb[20].mxu1 }
 0x123   : > { %v1383_v12 = vpop.f32.mrb[21].mxu0  ;;  %v1431_v17 = vpop.f32.mrb[21].mxu1 }
 0x124   : > { %v1384_v15 = vadd.f32 %v1383_v12, %v1382_v11  ;;  %v1385_v16 = vpop.f32.mrb[22].mxu0  ;;  %v1769_v19 = vadd.f32 %v1431_v17, %v1430_v14  ;;  %v1433_v20 = vpop.f32.mrb[22].mxu1  ;;  %v1049_v14 = vmul.f32 %v1724_v59, %v1724_v59  ;;  %v1050_v17 = vmul.f32 %v1729_v7, %v1729_v7 }
 0x125   : > { %v1386_v18 = vpop.f32.mrb[23].mxu0  ;;  %v1434_v24 = vpop.f32.mrb[23].mxu1 }
 0x126   : > { %972 = vst [vmem:[%s1717_s12 + $0x50] sm:$0xff] %v1384_v15  ;;  %v1003_v21 = vadd.f32 %v1384_v15, %v1002_v8  ;;  %v1042_v22 = vmul.f32 %v1384_v15, %v1384_v15  ;;  %v1387_v23 = vadd.f32 %v1386_v18, %v1385_v16  ;;  %988 = vst [vmem:[%s1717_s12 + $0xd0] sm:$0xff] %v1769_v19 }
 0x127   : > { %v1774_v26 = vadd.f32 %v1434_v24, %v1433_v20 }
 0x128   : > { %v1073_v27 = vadd.f32 %v1072_v10, %v1042_v22  ;;  %973 = vst [vmem:[%s1717_s12 + $0x58] sm:$0xff] %v1387_v23  ;;  %v1004_v28 = vadd.f32 %v1387_v23, %v1003_v21  ;;  %v1043_v29 = vmul.f32 %v1387_v23, %v1387_v23  ;;  %v1048_v10 = vmul.f32 %v1719_v55, %v1719_v55 }
 0x129   : > { %989 = vst [vmem:[%s1717_s12 + $0xd8] sm:$0xff] %v1774_v26  ;;  %v1051_v21 = vmul.f32 %v1734_v13, %v1734_v13 }
 0x12a   : > { %v1074_v30 = vadd.f32 %v1073_v27, %v1043_v29  ;;  %v1388_v32 = vpop.f32.mrb[24].mxu0  ;;  %v1436_v34 = vpop.f32.mrb[24].mxu1 }
 0x12b   : > { %v1389_v33 = vpop.f32.mrb[25].mxu0  ;;  %v1437_v37 = vpop.f32.mrb[25].mxu1 }
 0x12c   : > { %v1390_v35 = vadd.f32 %v1389_v33, %v1388_v32  ;;  %v1391_v36 = vpop.f32.mrb[26].mxu0  ;;  %v1779_v39 = vadd.f32 %v1437_v37, %v1436_v34  ;;  %v1439_v40 = vpop.f32.mrb[26].mxu1 }
 0x12d   : > { %v1392_v38 = vpop.f32.mrb[27].mxu0  ;;  %v1440_v45 = vpop.f32.mrb[27].mxu1 }
 0x12e   : > { %974 = vst [vmem:[%s1717_s12 + $0x60] sm:$0xff] %v1390_v35  ;;  %v1005_v41 = vadd.f32 %v1390_v35, %v1004_v28  ;;  %v1044_v42 = vmul.f32 %v1390_v35, %v1390_v35  ;;  %v1393_v44 = vadd.f32 %v1392_v38, %v1391_v36  ;;  %990 = vst [vmem:[%s1717_s12 + $0xe0] sm:$0xff] %v1779_v39 }
 0x12f   : > { %v1784_v46 = vadd.f32 %v1440_v45, %v1439_v40  ;;  %v1056_v35 = vmul.f32 %v1759_v63, %v1759_v63  ;;  %v1057_v38 = vmul.f32 %v1764_v5, %v1764_v5 }
 0x130   : > { %v1075_v47 = vadd.f32 %v1074_v30, %v1044_v42  ;;  %975 = vst [vmem:[%s1717_s12 + $0x68] sm:$0xff] %v1393_v44  ;;  %v1006_v48 = vadd.f32 %v1393_v44, %v1005_v41  ;;  %v1045_v50 = vmul.f32 %v1393_v44, %v1393_v44  ;;  %v1058_v41 = vmul.f32 %v1769_v19, %v1769_v19 }
 0x131   : > { %991 = vst [vmem:[%s1717_s12 + $0xe8] sm:$0xff] %v1784_v46 }
 0x132   : > { %v1076_v51 = vadd.f32 %v1075_v47, %v1045_v50  ;;  %v1394_v52 = vpop.f32.mrb[28].mxu0  ;;  %v1442_v54 = vpop.f32.mrb[28].mxu1  ;;  %v1060_v47 = vmul.f32 %v1779_v39, %v1779_v39 }
 0x133   : > { %v1395_v53 = vpop.f32.mrb[29].mxu0  ;;  %v1443_v58 = vpop.f32.mrb[29].mxu1 }
 0x134   : > { %v1396_v56 = vadd.f32 %v1395_v53, %v1394_v52  ;;  %v1397_v57 = vpop.f32.mrb[30].mxu0  ;;  %v1444_v61 = vadd.f32 %v1443_v58, %v1442_v54  ;;  %v1445_v62 = vpop.f32.mrb[30].mxu1 }
 0x135   : > { %v1398_v60 = vpop.f32.mrb[31].mxu0  ;;  %v1446_v3 = vpop.f32.mrb[31].mxu1 }
 0x136   : > { %976 = vst [vmem:[%s1717_s12 + $0x70] sm:$0xff] %v1396_v56  ;;  %v1007_v0 = vadd.f32 %v1396_v56, %v1006_v48  ;;  %v1046_v1 = vmul.f32 %v1396_v56, %v1396_v56  ;;  %v1399_v2 = vadd.f32 %v1398_v60, %v1397_v57  ;;  %992 = vst [vmem:[%s1717_s12 + $0xf0] sm:$0xff] %v1444_v61 }
 0x137   : > { %v1447_v4 = vadd.f32 %v1446_v3, %v1445_v62  ;;  %v1062_v50 = vmul.f32 %v1444_v61, %v1444_v61 }
 0x138   : > { %v1077_v6 = vadd.f32 %v1076_v51, %v1046_v1  ;;  %977 = vst [vmem:[%s1717_s12 + $0x78] sm:$0xff] %v1399_v2  ;;  %v1008_v8 = vadd.f32 %v1399_v2, %v1007_v0  ;;  %v1047_v9 = vmul.f32 %v1399_v2, %v1399_v2 }
 0x139   : > { %993 = vst [vmem:[%s1717_s12 + $0xf8] sm:$0xff] %v1447_v4  ;;  %v1063_v56 = vmul.f32 %v1447_v4, %v1447_v4 }
 0x13a   : > { %v1009_v11 = vadd.f32 %v1719_v55, %v1008_v8  ;;  %v1078_v12 = vadd.f32 %v1077_v6, %v1047_v9  ;;  %v1052_v55 = vmul.f32 %v1739_v25, %v1739_v25 }
 0x13c   : > { %v1010_v15 = vadd.f32 %v1724_v59, %v1009_v11  ;;  %v1079_v16 = vadd.f32 %v1078_v12, %v1048_v10  ;;  %v1053_v59 = vmul.f32 %v1744_v31, %v1744_v31 }
 0x13e   : > { %v1011_v18 = vadd.f32 %v1729_v7, %v1010_v15  ;;  %v1080_v20 = vadd.f32 %v1079_v16, %v1049_v14  ;;  %v1054_v7 = vmul.f32 %v1749_v43, %v1749_v43 }
 0x140   : > { %v1012_v22 = vadd.f32 %v1734_v13, %v1011_v18  ;;  %v1081_v23 = vadd.f32 %v1080_v20, %v1050_v17  ;;  %v1055_v13 = vmul.f32 %v1754_v49, %v1754_v49 }
 0x142   : > { %v1082_v24 = vadd.f32 %v1081_v23, %v1051_v21  ;;  %v1013_v27 = vadd.f32 %v1739_v25, %v1012_v22 }
 0x144   : > { %v1014_v28 = vadd.f32 %v1744_v31, %v1013_v27  ;;  %v1083_v29 = vadd.f32 %v1082_v24, %v1052_v55 }
 0x146   : > { %v1015_v30 = vadd.f32 %v1749_v43, %v1014_v28  ;;  %v1084_v32 = vadd.f32 %v1083_v29, %v1053_v59 }
 0x148   : > { %v1016_v33 = vadd.f32 %v1754_v49, %v1015_v30  ;;  %v1085_v34 = vadd.f32 %v1084_v32, %v1054_v7 }
 0x14a   : > { %v1017_v25 = vadd.f32 %v1759_v63, %v1016_v33  ;;  %v1086_v36 = vadd.f32 %v1085_v34, %v1055_v13  ;;  %v1059_v63 = vmul.f32 %v1774_v26, %v1774_v26 }
 0x14c   : > { %v1087_v31 = vadd.f32 %v1086_v36, %v1056_v35  ;;  %v1018_v37 = vadd.f32 %v1764_v5, %v1017_v25 }
 0x14e   : > { %v1088_v43 = vadd.f32 %v1087_v31, %v1057_v38  ;;  %v1019_v40 = vadd.f32 %v1769_v19, %v1018_v37  ;;  %v1061_v19 = vmul.f32 %v1784_v46, %v1784_v46 }
 0x150   : > { %v1089_v49 = vadd.f32 %v1088_v43, %v1058_v41  ;;  %v1020_v42 = vadd.f32 %v1774_v26, %v1019_v40 }
 0x152   : > { %v1090_v44 = vadd.f32 %v1089_v49, %v1059_v63  ;;  %v1021_v45 = vadd.f32 %v1779_v39, %v1020_v42 }
 0x154   : > { %v1091_v5 = vadd.f32 %v1090_v44, %v1060_v47  ;;  %v1022_v48 = vadd.f32 %v1784_v46, %v1021_v45 }
 0x156   : > { %v1092_v51 = vadd.f32 %v1091_v5, %v1061_v19  ;;  %v1023_v52 = vadd.f32 %v1444_v61, %v1022_v48 }
 0x158   : > { %v1093_v53 = vadd.f32 %v1092_v51, %v1062_v50  ;;  %v1024_v54 = vadd.f32 %v1447_v4, %v1023_v52 }
 0x15a   : > { %v1025_v26 = vrot.slane %v1024_v54, 4  ;;  %v1094_v57 = vadd.f32 %v1093_v53, %v1063_v56 }
 0x15c   : > { %v1026_v58 = vadd.f32 %v1025_v26, %v1024_v54  ;;  %v1095_v60 = vrot.slane %v1094_v57, 4 }
 0x15e   : > { %v1027_v62 = vrot.slane %v1026_v58, 2  ;;  %v1096_v39 = vadd.f32 %v1095_v60, %v1094_v57 }
 0x160   : > { %v1028_v0 = vadd.f32 %v1027_v62, %v1026_v58  ;;  %v1097_v1 = vrot.slane %v1096_v39, 2 }
 0x162   : > { %v1029_v2 = vrot.slane %v1028_v0, 1  ;;  %v1098_v3 = vadd.f32 %v1097_v1, %v1096_v39 }
 0x164   : > { %v1030_v46 = vadd.f32 %v1029_v2, %v1028_v0  ;;  %v1099_v61 = vrot.slane %v1098_v3, 1 }
 0x166   : > { %1031 = vst [vmem:[%s306_s13] sm:$0x1] %v1030_v46  ;;  %v1100_v4 = vadd.f32 %v1099_v61, %v1098_v3 }
 0x168   : > { %1101 = vst [vmem:[%s312_s20] sm:$0x1] %v1100_v4 }
 0x169 PF: > { %s15_s17 = sadd.s32 1, %s1574_s17   ;;  %s1857_s15 = smov %s1570_s16 }
 0x16a   : > { %p12_p6 = scmp.ge.s32.totalorder %s15_s17, 4   ;;  %s1858_s16 = smov %s1860_s18 }
 0x16c   :  { %14 = sbr.rel (!%p12_p6) target bundleno = 2 (0x2), region = 93 }

</bundles_post_ra>
